<compile_context>
chip_gen: v5e
topology: v5e:2x2
jax: 0.10.0
libtpu: 0.0.40
codegen_flags: <defaults>
</compile_context>

<pallas_src>
import math
from functools import partial

import jax
import jax.numpy as jnp
from jax.experimental import pallas as pl
from jax.experimental.pallas import tpu as pltpu


def cross_attention_kernel(trj_ref, vsn_ref, mask_ref, obd_ref, wqm_ref, wkv_ref,
                           out_ref,
                           q_scr, mix_scr, m_scr, l_scr, acc_scr,
                           *, use_bf16_exp):
    Bt, Lq, Dp = trj_ref.shape          # Lq multiple of 8, Dp multiple of 128
    tk = vsn_ref.shape[1]
    k_step = pl.program_id(1)

    # ---- per-batch-tile init: fused Q/mix projection + online-softmax state ----
    @pl.when(k_step == 0)
    def _():
        trj = trj_ref[...]                                        # (Bt, Lq, Dp) bf16
        # Free view: Lq % 8 == 0 and Dp % 128 == 0, so the collapse is aligned.
        qm = jnp.dot(trj.reshape(Bt * Lq, Dp), wqm_ref[...],
                     preferred_element_type=jnp.float32)          # (Bt*Lq, 2Dp) f32
        # Lane-aligned split (Dp is a multiple of 128); attn scale folded into Wq.
        q_scr[...] = qm[:, :Dp].reshape(Bt, Lq, Dp).astype(jnp.bfloat16)
        mix = jnp.maximum(qm[:, Dp:], 0.0).reshape(Bt, Lq, Dp)    # relu on VPU, f32
        mix_scr[...] = mix * obd_ref[...]                         # (Bt,Lq,1) lane bcast
        m_scr[...] = jnp.full_like(m_scr, -jnp.inf)
        l_scr[...] = jnp.zeros_like(l_scr)
        acc_scr[...] = jnp.zeros_like(acc_scr)

    # ---- K/V projection for this key block (one fused MXU matmul) ----
    vsn = vsn_ref[...]                                            # (Bt, tk, Dp) bf16
    kv = jnp.dot(vsn.reshape(Bt * tk, Dp), wkv_ref[...],
                 preferred_element_type=jnp.float32)              # (Bt*tk, 2Dp) f32
    k = kv[:, :Dp].reshape(Bt, tk, Dp).astype(jnp.bfloat16)
    v = kv[:, Dp:].reshape(Bt, tk, Dp).astype(jnp.bfloat16)

    q = q_scr[...]                                                # (Bt, Lq, Dp) bf16

    # ---- scores (contract feature dim, no explicit transpose) + online softmax ----
    s = jnp.einsum('bqd,bkd->bqk', q, k,
                   preferred_element_type=jnp.float32)            # (Bt, Lq, tk) f32
    s = s + mask_ref[...].astype(jnp.float32)                     # mask streamed bf16

    m_prev = m_scr[...]
    m_new = jnp.maximum(m_prev, jnp.max(s, axis=-1, keepdims=True))
    alpha = jnp.exp(m_prev - m_new)
    if use_bf16_exp:
        # v6e/v7x: bf16 EUP -> ~2x exp throughput; row-sum stays f32.
        p = jnp.exp((s - m_new).astype(jnp.bfloat16))
        p_sum = jnp.sum(p.astype(jnp.float32), axis=-1, keepdims=True)
        p_mm = p
    else:
        # v5e: no bf16 EUP/VPU -> keep exp in f32, cast only for the PV matmul.
        p = jnp.exp(s - m_new)
        p_sum = jnp.sum(p, axis=-1, keepdims=True)
        p_mm = p.astype(jnp.bfloat16)

    l_scr[...] = alpha * l_scr[...] + p_sum
    acc_scr[...] = alpha * acc_scr[...] + jnp.einsum(
        'bqk,bkd->bqd', p_mm, v, preferred_element_type=jnp.float32)
    m_scr[...] = m_new

    # ---- finalize on the last key block: deferred normalization + fused add ----
    @pl.when(k_step == pl.num_programs(1) - 1)
    def _():
        inv_l = pl.reciprocal(l_scr[...], approx=True)            # EUP slot, ~free
        out_ref[...] = (acc_scr[...] * inv_l + mix_scr[...]).astype(out_ref.dtype)


def cross_attention(src_trj, src_vsn, src_mask, obd_enc_mask, wq, wk, wv, wm):
    B, Lq, D = src_trj.shape
    Lk = src_vsn.shape[1]
    out_dtype = src_trj.dtype
    out_bytes = jnp.dtype(out_dtype).itemsize

    # ---- generation detection (conservative defaults) ----
    kind = jax.devices()[0].device_kind.lower()
    is_v5e = ("v5" in kind) and (("lite" in kind) or ("5e" in kind))
    is_v7 = "v7" in kind
    use_bf16_exp = ("v6" in kind) or is_v7        # bf16 EUP on v6e/v7x only

    # ---- lane/sublane padding: D -> mult of 128, Lq/Lk -> mult of 8 ----
    LANE, SUB = 128, 8
    D_pad = max(LANE, ((D + LANE - 1) // LANE) * LANE)
    Lq_pad = ((Lq + SUB - 1) // SUB) * SUB
    TK_MAX = 512                                  # key-block width when Lk is long
    Lk_pad = ((Lk + SUB - 1) // SUB) * SUB
    if Lk_pad > TK_MAX:
        tk = TK_MAX                               # multiple of 128 -> legal block dim
        Lk_pad = ((Lk + tk - 1) // tk) * tk
    else:
        tk = Lk_pad                               # single key block (full dim)
    num_k = Lk_pad // tk

    # ---- batch tile: fill the MXU (>=256 projection rows), keep >=2 batch steps on
    # v7x (2 TCs), cap by a per-generation VMEM footprint budget ----
    bt = max(1, min(B, (256 + Lq_pad - 1) // Lq_pad))
    if is_v7 and B >= 2:
        bt = min(bt, (B + 1) // 2)
    vmem_cap = (64 if is_v7 else 128) << 20
    vmem_budget = int(0.70 * vmem_cap)
    n_buf = 3 if (is_v5e and num_k > 1) else 2    # deeper prefetch only on v5e

    def footprint(bt_):
        stream = bt_ * (Lq_pad * D_pad * 2 + tk * D_pad * 2
                        + Lq_pad * tk * 2 + Lq_pad * LANE * 4)          # trj/vsn/mask/obd
        weights = 2 * (D_pad * 2 * D_pad * 2) * 2                        # 2 tensors, 2 bufs
        outb = 2 * bt_ * Lq_pad * D_pad * out_bytes
        scratch = bt_ * Lq_pad * (D_pad * 2 + 2 * D_pad * 4 + 2 * 4)     # q/mix/acc/m/l
        interm = bt_ * (Lq_pad * 2 * D_pad * 4 + tk * 2 * D_pad * 4
                        + 2 * Lq_pad * tk * 4 + Lq_pad * D_pad * 4)
        return n_buf * stream + weights + outb + scratch + interm

    while bt > 1 and footprint(bt) > vmem_budget:
        bt = max(1, bt // 2)
    vmem_limit = int(min(vmem_cap - (8 << 20), max(32 << 20, 2 * footprint(bt))))

    B_pad = ((B + bt - 1) // bt) * bt
    nb = B_pad // bt

    # ---- fold attn scale into Wq, fuse [Wq|Wm] / [Wk|Wv], zero-pad to D_pad ----
    scale = 1.0 / math.sqrt(D)

    def pad_w(w):
        return jnp.pad(w, ((0, D_pad - D), (0, D_pad - D)))

    w_qm = jnp.concatenate([pad_w(wq * scale), pad_w(wm)], axis=1).astype(jnp.bfloat16)
    w_kv = jnp.concatenate([pad_w(wk), pad_w(wv)], axis=1).astype(jnp.bfloat16)

    # ---- pad activations / masks (bf16 MXU streams, bf16 mask, f32 gate) ----
    trj = jnp.pad(src_trj.astype(jnp.bfloat16),
                  ((0, B_pad - B), (0, Lq_pad - Lq), (0, D_pad - D)))
    vsn = jnp.pad(src_vsn.astype(jnp.bfloat16),
                  ((0, B_pad - B), (0, Lk_pad - Lk), (0, D_pad - D)))
    amask = jnp.pad(src_mask.astype(jnp.float32),
                    ((0, B_pad - B), (0, Lq_pad - Lq), (0, Lk_pad - Lk)))
    if Lk_pad > Lk:
        key_pad = jnp.arange(Lk_pad) >= Lk
        amask = jnp.where(key_pad[None, None, :], -1e9, amask)   # drop padded keys
    amask = amask.astype(jnp.bfloat16)
    obd = jnp.pad(jnp.reshape(obd_enc_mask, (B, Lq, 1)).astype(jnp.float32),
                  ((0, B_pad - B), (0, Lq_pad - Lq), (0, 0)))

    # ---- cost estimate (helps XLA schedule around the custom call) ----
    flops = 2 * B_pad * (Lq_pad * D_pad * 2 * D_pad          # QM projection
                         + Lk_pad * D_pad * 2 * D_pad        # KV projection
                         + 2 * Lq_pad * Lk_pad * D_pad)      # scores + PV
    cost = pl.CostEstimate(
        flops=int(flops),
        transcendentals=int(B_pad * Lq_pad * Lk_pad),
        bytes_accessed=int(trj.size * 2 + vsn.size * 2 + amask.size * 2
                           + obd.size * 4 + w_qm.size * 2 + w_kv.size * 2
                           + B_pad * Lq_pad * D_pad * out_bytes),
    )

    stream_mode = pl.Buffered(n_buf) if n_buf != 2 else None

    def stream_spec(shape, idx):
        if stream_mode is not None:
            return pl.BlockSpec(shape, idx, pipeline_mode=stream_mode)
        return pl.BlockSpec(shape, idx)

    grid_spec = pltpu.PrefetchScalarGridSpec(
        num_scalar_prefetch=0,
        grid=(nb, num_k),
        in_specs=[
            pl.BlockSpec((bt, Lq_pad, D_pad), lambda b, k: (b, 0, 0)),    # trj (held over k)
            stream_spec((bt, tk, D_pad), lambda b, k: (b, k, 0)),         # vsn
            stream_spec((bt, Lq_pad, tk), lambda b, k: (b, 0, k)),        # mask (bf16)
            pl.BlockSpec((bt, Lq_pad, 1), lambda b, k: (b, 0, 0)),        # obd gate
            pl.BlockSpec((D_pad, 2 * D_pad), lambda b, k: (0, 0)),        # [Wq|Wm] resident
            pl.BlockSpec((D_pad, 2 * D_pad), lambda b, k: (0, 0)),        # [Wk|Wv] resident
        ],
        out_specs=pl.BlockSpec((bt, Lq_pad, D_pad), lambda b, k: (b, 0, 0)),
        scratch_shapes=[
            pltpu.VMEM((bt, Lq_pad, D_pad), jnp.bfloat16),   # q
            pltpu.VMEM((bt, Lq_pad, D_pad), jnp.float32),    # mix
            pltpu.VMEM((bt, Lq_pad, 1), jnp.float32),        # m (online-softmax max)
            pltpu.VMEM((bt, Lq_pad, 1), jnp.float32),        # l (online-softmax sum)
            pltpu.VMEM((bt, Lq_pad, D_pad), jnp.float32),    # acc
        ],
    )

    out = pl.pallas_call(
        partial(cross_attention_kernel, use_bf16_exp=use_bf16_exp),
        out_shape=jax.ShapeDtypeStruct((B_pad, Lq_pad, D_pad), out_dtype),
        grid_spec=grid_spec,
        compiler_params=pltpu.CompilerParams(
            dimension_semantics=("parallel", "arbitrary"),
            vmem_limit_bytes=vmem_limit),
        cost_estimate=cost,
    )(trj, vsn, amask, obd, w_qm, w_kv)

    return out[:B, :Lq, :D]


if __name__ == "__main__":
    B, Lq, Lk, D = 2, 8, 8, 32
    key = jax.random.PRNGKey(0)
    k_trj, k_vsn, k_wq, k_wk, k_wv, k_wm = jax.random.split(key, 6)

    src_trj = jax.random.normal(k_trj, (B, Lq, D), dtype=jnp.float32)
    src_vsn = jax.random.normal(k_vsn, (B, Lk, D), dtype=jnp.float32)

    # Additive attention mask: mask out the last two key positions of batch 1.
    # (Finite -1e9 mask: fully-masked rows give a uniform distribution, like torch.)
    src_mask = jnp.zeros((B, Lq, Lk), dtype=jnp.float32)
    src_mask = src_mask.at[1, :, Lk - 2:].set(-1e9)

    # Multiplicative gate mask on the mix branch: zero out last query row of batch 0.
    obd_enc_mask = jnp.ones((B, Lq, 1), dtype=jnp.float32)
    obd_enc_mask = obd_enc_mask.at[0, Lq - 1, 0].set(0.0)

    # Deterministic synthetic encoder weights.
    scale = 1.0 / math.sqrt(D)
    wq = jax.random.normal(k_wq, (D, D), dtype=jnp.float32) * scale
    wk = jax.random.normal(k_wk, (D, D), dtype=jnp.float32) * scale
    wv = jax.random.normal(k_wv, (D, D), dtype=jnp.float32) * scale
    wm = jax.random.normal(k_wm, (D, D), dtype=jnp.float32) * scale

    out = cross_attention(src_trj, src_vsn, src_mask, obd_enc_mask, wq, wk, wv, wm)
    jax.block_until_ready(out)

    # Pure-JAX f32 reference of the same synthetic encoder + fused add.
    def ref(trj, vsn, amask, obd):
        q = trj @ wq
        k = vsn @ wk
        v = vsn @ wv
        s = (q @ jnp.swapaxes(k, -1, -2)) / math.sqrt(D) + amask
        attn = jax.nn.softmax(s, axis=-1)
        code = attn @ v
        mix = jax.nn.relu(trj @ wm) * obd
        return code + mix

    expected = ref(src_trj, src_vsn, src_mask, obd_enc_mask)
    # bf16 MXU operands (+ bf16 exp on v6e/v7x) + approx reciprocal => loosened tolerance.
    assert jnp.allclose(out, expected, atol=5e-2, rtol=5e-2), "mismatch vs reference"

    # TODO(synk): `self.out = nn.Embedding(512, 512)` is never used in forward; not translated.
    print("KERNEL_OK")
</pallas_src>

<mosaic_0001>
module attributes {stable_mosaic.version = 11 : i64} {
  func.func @cross_attention_kernel(%arg0: i32, %arg1: i32, %arg2: memref<2x8x128xbf16, #tpu.memory_space<vmem>>, %arg3: memref<2x8x128xbf16, #tpu.memory_space<vmem>>, %arg4: memref<2x8x8xbf16, #tpu.memory_space<vmem>>, %arg5: memref<2x8x1xf32, #tpu.memory_space<vmem>>, %arg6: memref<128x256xbf16, #tpu.memory_space<vmem>>, %arg7: memref<128x256xbf16, #tpu.memory_space<vmem>>, %arg8: memref<2x8x128xf32, #tpu.memory_space<vmem>>, %arg9: memref<2x8x128xbf16, #tpu.memory_space<vmem>>, %arg10: memref<2x8x128xf32, #tpu.memory_space<vmem>>, %arg11: memref<2x8x1xf32, #tpu.memory_space<vmem>>, %arg12: memref<2x8x1xf32, #tpu.memory_space<vmem>>, %arg13: memref<2x8x128xf32, #tpu.memory_space<vmem>>) attributes {dimension_semantics = [#tpu.dimension_semantics<parallel>, #tpu.dimension_semantics<arbitrary>], iteration_bounds = array<i64: 1, 1>, scalar_prefetch = 0 : i64, scratch_operands = 5 : i64, tpu.core_type = #tpu.core_type<tc>, window_params = [{transform_indices = @transform_0, window_bounds = array<i64: 2, 8, 128>}, {transform_indices = @transform_1, window_bounds = array<i64: 2, 8, 128>}, {transform_indices = @transform_2, window_bounds = array<i64: 2, 8, 8>}, {transform_indices = @transform_3, window_bounds = array<i64: 2, 8, 1>}, {pipeline_mode = #tpu.pipeline_mode<synchronous>, transform_indices = @transform_4, window_bounds = array<i64: 128, 256>}, {pipeline_mode = #tpu.pipeline_mode<synchronous>, transform_indices = @transform_5, window_bounds = array<i64: 128, 256>}, {transform_indices = @transform_6, window_bounds = array<i64: 2, 8, 128>}]} {
    %c0_i32 = arith.constant 0 : i32
    %0 = arith.cmpi eq, %arg1, %c0_i32 : i32
    %1 = arith.extui %0 : i1 to i32
    %c0_i32_0 = arith.constant 0 : i32
    %2 = arith.cmpi ne, %1, %c0_i32_0 : i32
    scf.if %2 {
      %c0_35 = arith.constant 0 : index
      %c0_36 = arith.constant 0 : index
      %c0_37 = arith.constant 0 : index
      %44 = vector.load %arg2[%c0_35, %c0_36, %c0_37] : memref<2x8x128xbf16, #tpu.memory_space<vmem>>, vector<2x8x128xbf16>
      %45 = vector.shape_cast %44 : vector<2x8x128xbf16> to vector<16x128xbf16>
      %c0_38 = arith.constant 0 : index
      %c0_39 = arith.constant 0 : index
      %46 = vector.load %arg6[%c0_38, %c0_39] : memref<128x256xbf16, #tpu.memory_space<vmem>>, vector<128x256xbf16>
      %cst_40 = arith.constant dense<0.000000e+00> : vector<16x256xf32>
      %47 = tpu.matmul %45, %46, %cst_40 {dimension_numbers = #tpu.dot_dimension_numbers<[1], [0], [0], [1], [0, 0, 1, 1], [], []>} : vector<16x128xbf16>, vector<128x256xbf16>, vector<16x256xf32> -> vector<16x256xf32>
      %48 = vector.extract_strided_slice %47 {offsets = [0, 0], sizes = [16, 128], strides = [1, 1]} : vector<16x256xf32> to vector<16x128xf32>
      %49 = vector.shape_cast %48 : vector<16x128xf32> to vector<2x8x128xf32>
      %50 = arith.truncf %49 : vector<2x8x128xf32> to vector<2x8x128xbf16>
      %c0_41 = arith.constant 0 : index
      %c0_42 = arith.constant 0 : index
      %c0_43 = arith.constant 0 : index
      %51 = vector.load %arg9[%c0_41, %c0_42, %c0_43] : memref<2x8x128xbf16, #tpu.memory_space<vmem>>, vector<2x8x128xbf16>
      tpu.vector_store %arg9[%c0_41, %c0_42, %c0_43], %50 {strides = array<i32>} : memref<2x8x128xbf16, #tpu.memory_space<vmem>>, vector<2x8x128xbf16>,
      %52 = vector.extract_strided_slice %47 {offsets = [0, 128], sizes = [16, 128], strides = [1, 1]} : vector<16x256xf32> to vector<16x128xf32>
      %cst_44 = arith.constant 0.000000e+00 : f32
      %53 = vector.broadcast %cst_44 : f32 to vector<16x128xf32>
      %54 = arith.maximumf %52, %53 : vector<16x128xf32>
      %55 = vector.shape_cast %54 : vector<16x128xf32> to vector<2x8x128xf32>
      %c0_45 = arith.constant 0 : index
      %c0_46 = arith.constant 0 : index
      %c0_47 = arith.constant 0 : index
      %56 = vector.load %arg5[%c0_45, %c0_46, %c0_47] : memref<2x8x1xf32, #tpu.memory_space<vmem>>, vector<2x8x1xf32>
      %57 = vector.broadcast %56 : vector<2x8x1xf32> to vector<2x8x128xf32>
      %58 = arith.mulf %55, %57 : vector<2x8x128xf32>
      %c0_48 = arith.constant 0 : index
      %c0_49 = arith.constant 0 : index
      %c0_50 = arith.constant 0 : index
      %59 = vector.load %arg10[%c0_48, %c0_49, %c0_50] : memref<2x8x128xf32, #tpu.memory_space<vmem>>, vector<2x8x128xf32>
      tpu.vector_store %arg10[%c0_48, %c0_49, %c0_50], %58 {strides = array<i32>} : memref<2x8x128xf32, #tpu.memory_space<vmem>>, vector<2x8x128xf32>,
      %cst_51 = arith.constant 0xFF800000 : f32
      %60 = vector.broadcast %cst_51 : f32 to vector<2x8x1xf32>
      %c0_52 = arith.constant 0 : index
      %c0_53 = arith.constant 0 : index
      %c0_54 = arith.constant 0 : index
      %61 = vector.load %arg11[%c0_52, %c0_53, %c0_54] : memref<2x8x1xf32, #tpu.memory_space<vmem>>, vector<2x8x1xf32>
      tpu.vector_store %arg11[%c0_52, %c0_53, %c0_54], %60 {strides = array<i32>} : memref<2x8x1xf32, #tpu.memory_space<vmem>>, vector<2x8x1xf32>,
      %cst_55 = arith.constant 0.000000e+00 : f32
      %62 = vector.broadcast %cst_55 : f32 to vector<2x8x1xf32>
      %c0_56 = arith.constant 0 : index
      %c0_57 = arith.constant 0 : index
      %c0_58 = arith.constant 0 : index
      %63 = vector.load %arg12[%c0_56, %c0_57, %c0_58] : memref<2x8x1xf32, #tpu.memory_space<vmem>>, vector<2x8x1xf32>
      tpu.vector_store %arg12[%c0_56, %c0_57, %c0_58], %62 {strides = array<i32>} : memref<2x8x1xf32, #tpu.memory_space<vmem>>, vector<2x8x1xf32>,
      %cst_59 = arith.constant 0.000000e+00 : f32
      %64 = vector.broadcast %cst_59 : f32 to vector<2x8x128xf32>
      %c0_60 = arith.constant 0 : index
      %c0_61 = arith.constant 0 : index
      %c0_62 = arith.constant 0 : index
      %65 = vector.load %arg13[%c0_60, %c0_61, %c0_62] : memref<2x8x128xf32, #tpu.memory_space<vmem>>, vector<2x8x128xf32>
      tpu.vector_store %arg13[%c0_60, %c0_61, %c0_62], %64 {strides = array<i32>} : memref<2x8x128xf32, #tpu.memory_space<vmem>>, vector<2x8x128xf32>,
    } else {
    }
    %c0 = arith.constant 0 : index
    %c0_1 = arith.constant 0 : index
    %c0_2 = arith.constant 0 : index
    %3 = vector.load %arg3[%c0, %c0_1, %c0_2] : memref<2x8x128xbf16, #tpu.memory_space<vmem>>, vector<2x8x128xbf16>
    %4 = vector.shape_cast %3 : vector<2x8x128xbf16> to vector<16x128xbf16>
    %c0_3 = arith.constant 0 : index
    %c0_4 = arith.constant 0 : index
    %5 = vector.load %arg7[%c0_3, %c0_4] : memref<128x256xbf16, #tpu.memory_space<vmem>>, vector<128x256xbf16>
    %cst = arith.constant dense<0.000000e+00> : vector<16x256xf32>
    %6 = tpu.matmul %4, %5, %cst {dimension_numbers = #tpu.dot_dimension_numbers<[1], [0], [0], [1], [0, 0, 1, 1], [], []>} : vector<16x128xbf16>, vector<128x256xbf16>, vector<16x256xf32> -> vector<16x256xf32>
    %7 = vector.extract_strided_slice %6 {offsets = [0, 0], sizes = [16, 128], strides = [1, 1]} : vector<16x256xf32> to vector<16x128xf32>
    %8 = vector.shape_cast %7 : vector<16x128xf32> to vector<2x8x128xf32>
    %9 = arith.truncf %8 : vector<2x8x128xf32> to vector<2x8x128xbf16>
    %10 = vector.extract_strided_slice %6 {offsets = [0, 128], sizes = [16, 128], strides = [1, 1]} : vector<16x256xf32> to vector<16x128xf32>
    %11 = vector.shape_cast %10 : vector<16x128xf32> to vector<2x8x128xf32>
    %12 = arith.truncf %11 : vector<2x8x128xf32> to vector<2x8x128xbf16>
    %c0_5 = arith.constant 0 : index
    %c0_6 = arith.constant 0 : index
    %c0_7 = arith.constant 0 : index
    %13 = vector.load %arg9[%c0_5, %c0_6, %c0_7] : memref<2x8x128xbf16, #tpu.memory_space<vmem>>, vector<2x8x128xbf16>
    "tpu.trace_start"() <{level = 10 : i32, message = "bqd,bkd->bqk"}> : () -> ()
    %cst_8 = arith.constant dense<0.000000e+00> : vector<2x8x8xf32>
    %14 = tpu.matmul %13, %9, %cst_8 {dimension_numbers = #tpu.dot_dimension_numbers<[2], [2], [1], [1], [0, 0, 0, 1, 1, 1], [0], [0]>} : vector<2x8x128xbf16>, vector<2x8x128xbf16>, vector<2x8x8xf32> -> vector<2x8x8xf32>
    "tpu.trace_stop"() : () -> ()
    %c0_9 = arith.constant 0 : index
    %c0_10 = arith.constant 0 : index
    %c0_11 = arith.constant 0 : index
    %15 = vector.load %arg4[%c0_9, %c0_10, %c0_11] : memref<2x8x8xbf16, #tpu.memory_space<vmem>>, vector<2x8x8xbf16>
    %16 = arith.extf %15 : vector<2x8x8xbf16> to vector<2x8x8xf32>
    %17 = arith.addf %14, %16 : vector<2x8x8xf32>
    %c0_12 = arith.constant 0 : index
    %c0_13 = arith.constant 0 : index
    %c0_14 = arith.constant 0 : index
    %18 = vector.load %arg11[%c0_12, %c0_13, %c0_14] : memref<2x8x1xf32, #tpu.memory_space<vmem>>, vector<2x8x1xf32>
    %cst_15 = arith.constant dense<0xFF800000> : vector<2x8xf32>
    %19 = vector.multi_reduction <maximumf>, %17, %cst_15 [2] : vector<2x8x8xf32> to vector<2x8xf32>
    %20 = vector.shape_cast %19 : vector<2x8xf32> to vector<2x8x1xf32>
    %21 = arith.maximumf %18, %20 : vector<2x8x1xf32>
    %22 = arith.subf %18, %21 : vector<2x8x1xf32>
    %23 = math.exp %22 : vector<2x8x1xf32>
    %24 = vector.broadcast %21 : vector<2x8x1xf32> to vector<2x8x8xf32>
    %25 = arith.subf %17, %24 : vector<2x8x8xf32>
    %26 = math.exp %25 : vector<2x8x8xf32>
    %cst_16 = arith.constant dense<0.000000e+00> : vector<2x8xf32>
    %27 = vector.multi_reduction <add>, %26, %cst_16 [2] : vector<2x8x8xf32> to vector<2x8xf32>
    %28 = vector.shape_cast %27 : vector<2x8xf32> to vector<2x8x1xf32>
    %29 = arith.truncf %26 : vector<2x8x8xf32> to vector<2x8x8xbf16>
    %c0_17 = arith.constant 0 : index
    %c0_18 = arith.constant 0 : index
    %c0_19 = arith.constant 0 : index
    %30 = vector.load %arg12[%c0_17, %c0_18, %c0_19] : memref<2x8x1xf32, #tpu.memory_space<vmem>>, vector<2x8x1xf32>
    %31 = arith.mulf %23, %30 : vector<2x8x1xf32>
    %32 = arith.addf %31, %28 : vector<2x8x1xf32>
    %c0_20 = arith.constant 0 : index
    %c0_21 = arith.constant 0 : index
    %c0_22 = arith.constant 0 : index
    %33 = vector.load %arg12[%c0_20, %c0_21, %c0_22] : memref<2x8x1xf32, #tpu.memory_space<vmem>>, vector<2x8x1xf32>
    tpu.vector_store %arg12[%c0_20, %c0_21, %c0_22], %32 {strides = array<i32>} : memref<2x8x1xf32, #tpu.memory_space<vmem>>, vector<2x8x1xf32>,
    %c0_23 = arith.constant 0 : index
    %c0_24 = arith.constant 0 : index
    %c0_25 = arith.constant 0 : index
    %34 = vector.load %arg13[%c0_23, %c0_24, %c0_25] : memref<2x8x128xf32, #tpu.memory_space<vmem>>, vector<2x8x128xf32>
    %35 = vector.broadcast %23 : vector<2x8x1xf32> to vector<2x8x128xf32>
    %36 = arith.mulf %35, %34 : vector<2x8x128xf32>
    "tpu.trace_start"() <{level = 10 : i32, message = "bqk,bkd->bqd"}> : () -> ()
    %cst_26 = arith.constant dense<0.000000e+00> : vector<2x8x128xf32>
    %37 = tpu.matmul %29, %12, %cst_26 {dimension_numbers = #tpu.dot_dimension_numbers<[2], [1], [1], [2], [0, 0, 0, 1, 1, 2], [0], [0]>} : vector<2x8x8xbf16>, vector<2x8x128xbf16>, vector<2x8x128xf32> -> vector<2x8x128xf32>
    "tpu.trace_stop"() : () -> ()
    %38 = arith.addf %36, %37 : vector<2x8x128xf32>
    %c0_27 = arith.constant 0 : index
    %c0_28 = arith.constant 0 : index
    %c0_29 = arith.constant 0 : index
    %39 = vector.load %arg13[%c0_27, %c0_28, %c0_29] : memref<2x8x128xf32, #tpu.memory_space<vmem>>, vector<2x8x128xf32>
    tpu.vector_store %arg13[%c0_27, %c0_28, %c0_29], %38 {strides = array<i32>} : memref<2x8x128xf32, #tpu.memory_space<vmem>>, vector<2x8x128xf32>,
    %c0_30 = arith.constant 0 : index
    %c0_31 = arith.constant 0 : index
    %c0_32 = arith.constant 0 : index
    %40 = vector.load %arg11[%c0_30, %c0_31, %c0_32] : memref<2x8x1xf32, #tpu.memory_space<vmem>>, vector<2x8x1xf32>
    tpu.vector_store %arg11[%c0_30, %c0_31, %c0_32], %21 {strides = array<i32>} : memref<2x8x1xf32, #tpu.memory_space<vmem>>, vector<2x8x1xf32>,
    %c0_i32_33 = arith.constant 0 : i32
    %41 = arith.cmpi eq, %arg1, %c0_i32_33 : i32
    %42 = arith.extui %41 : i1 to i32
    %c0_i32_34 = arith.constant 0 : i32
    %43 = arith.cmpi ne, %42, %c0_i32_34 : i32
    scf.if %43 {
      %c0_35 = arith.constant 0 : index
      %c0_36 = arith.constant 0 : index
      %c0_37 = arith.constant 0 : index
      %44 = vector.load %arg12[%c0_35, %c0_36, %c0_37] : memref<2x8x1xf32, #tpu.memory_space<vmem>>, vector<2x8x1xf32>
      %45 = tpu.reciprocal %44 {approx = true} : vector<2x8x1xf32> -> vector<2x8x1xf32>
      %c0_38 = arith.constant 0 : index
      %c0_39 = arith.constant 0 : index
      %c0_40 = arith.constant 0 : index
      %46 = vector.load %arg13[%c0_38, %c0_39, %c0_40] : memref<2x8x128xf32, #tpu.memory_space<vmem>>, vector<2x8x128xf32>
      %47 = vector.broadcast %45 : vector<2x8x1xf32> to vector<2x8x128xf32>
      %48 = arith.mulf %46, %47 : vector<2x8x128xf32>
      %c0_41 = arith.constant 0 : index
      %c0_42 = arith.constant 0 : index
      %c0_43 = arith.constant 0 : index
      %49 = vector.load %arg10[%c0_41, %c0_42, %c0_43] : memref<2x8x128xf32, #tpu.memory_space<vmem>>, vector<2x8x128xf32>
      %50 = arith.addf %48, %49 : vector<2x8x128xf32>
      %c0_44 = arith.constant 0 : index
      %c0_45 = arith.constant 0 : index
      %c0_46 = arith.constant 0 : index
      %51 = vector.load %arg8[%c0_44, %c0_45, %c0_46] : memref<2x8x128xf32, #tpu.memory_space<vmem>>, vector<2x8x128xf32>
      tpu.vector_store %arg8[%c0_44, %c0_45, %c0_46], %50 {strides = array<i32>} : memref<2x8x128xf32, #tpu.memory_space<vmem>>, vector<2x8x128xf32>,
    } else {
    }
    return
  }
  func.func @transform_0(%arg0: i32, %arg1: i32) -> (i32, i32, i32) {
    %c0_i32 = arith.constant 0 : i32
    %c0_i32_0 = arith.constant 0 : i32
    %c0_i32_1 = arith.constant 0 : i32
    return %arg0, %c0_i32, %c0_i32_0 : i32, i32, i32
  }
  func.func @transform_1(%arg0: i32, %arg1: i32) -> (i32, i32, i32) {
    %c0_i32 = arith.constant 0 : i32
    %c0_i32_0 = arith.constant 0 : i32
    return %arg0, %arg1, %c0_i32 : i32, i32, i32
  }
  func.func @transform_2(%arg0: i32, %arg1: i32) -> (i32, i32, i32) {
    %c0_i32 = arith.constant 0 : i32
    %c0_i32_0 = arith.constant 0 : i32
    return %arg0, %c0_i32, %arg1 : i32, i32, i32
  }
  func.func @transform_3(%arg0: i32, %arg1: i32) -> (i32, i32, i32) {
    %c0_i32 = arith.constant 0 : i32
    %c0_i32_0 = arith.constant 0 : i32
    %c0_i32_1 = arith.constant 0 : i32
    return %arg0, %c0_i32, %c0_i32_0 : i32, i32, i32
  }
  func.func @transform_4(%arg0: i32, %arg1: i32) -> (i32, i32) {
    %c0_i32 = arith.constant 0 : i32
    %c0_i32_0 = arith.constant 0 : i32
    %c0_i32_1 = arith.constant 0 : i32
    return %c0_i32, %c0_i32_0 : i32, i32
  }
  func.func @transform_5(%arg0: i32, %arg1: i32) -> (i32, i32) {
    %c0_i32 = arith.constant 0 : i32
    %c0_i32_0 = arith.constant 0 : i32
    %c0_i32_1 = arith.constant 0 : i32
    return %c0_i32, %c0_i32_0 : i32, i32
  }
  func.func @transform_6(%arg0: i32, %arg1: i32) -> (i32, i32, i32) {
    %c0_i32 = arith.constant 0 : i32
    %c0_i32_0 = arith.constant 0 : i32
    %c0_i32_1 = arith.constant 0 : i32
    return %arg0, %c0_i32, %c0_i32_0 : i32, i32, i32
  }
}

</mosaic_0001>

<bundles_post_ra>
// kernel: tpu_custom_call.1
= control target key start
LH: loop header
LB: loop body
LE: loop exit
PB: predicated region body
PF: predicated region fallthrough
CT: control target
= control target key end

     0   :  { %11 = vsyncpa [#allocation8], 0  ;;  %s981_s0 = inlined_call_operand.vmem [shape: bf16[2,8,128], index: 0, kind: input, shape index: {}]   ;;  %s982_s1 = inlined_call_operand.vmem [shape: bf16[2,8,128], index: 1, kind: input, shape index: {}]   ;;  %s983_s2 = inlined_call_operand.hbm [shape: bf16[2,8,8], index: 2, kind: input, shape index: {}]   ;;  %s984_s3 = inlined_call_operand.vmem [shape: f32[2,8,1], index: 3, kind: input, shape index: {}]   ;;  %s985_s4 = inlined_call_operand.hbm [shape: bf16[128,256], index: 4, kind: input, shape index: {}]   ;;  %s986_s5 = inlined_call_operand.hbm [shape: bf16[128,256], index: 5, kind: input, shape index: {}]   ;;  %s987_s6 = inlined_call_operand.hbm [shape: f32[2,8,128], index: 6, kind: output, shape index: {}]  }
   0x1   :  { %12 = vsyncpa [#allocation11], 0  ;;  %s37_s23 = sshll.u32 %s985_s4, 4  ;;  %s38_s23 = int_to_ptr.hbm [resolvable:$true] %s37_s23 }
   0x2   :  { %13 = vsyncpa [#allocation9], 0  ;;  %s870_s24 = smov [#allocation10]   ;;  %s22_s28 = sshll.u32 %s983_s2, 4  ;;  %s23_s28 = int_to_ptr.hbm [resolvable:$true] %s22_s28 }
   0x3   :  { %s39_s25 = sshll.u32 %s870_s24, 4  ;;  %s871_s29 = smov 128   ;;  %s40_s25 = int_to_ptr.vmem [resolvable:$true] %s39_s25 }
   0x4   :  { %s872_s30 = smov 8   ;;  %s873_s7 = smov [#allocation7]  }
   0x5   :  { %45 = dma.hbm_to_vmem [thread:$0]  %s38_s23, 2048, %s40_s25, [#allocation11], %s871_s29, %s871_s29, %s872_s30  }
   0x6   :  { %s24_s8 = sshll.u32 %s873_s7, 4  ;;  %s874_s4 = smov 64   ;;  %s25_s8 = int_to_ptr.vmem [resolvable:$true] %s24_s8 }
   0x7   :  { %s875_s9 = smov 4   ;;  %s50_s12 = sshll.u32 %s986_s5, 4  ;;  %s51_s12 = int_to_ptr.hbm [resolvable:$true] %s50_s12 }
   0x8   :  { %30 = dma.hbm_to_vmem [thread:$0]  %s23_s28, 128, %s25_s8, [#allocation8], %s874_s4, %s874_s4, %s875_s9  }
   0x9   :  { %s876_s13 = smov [#allocation12]  }
   0xa   :  { %s52_s2 = sshll.u32 %s876_s13, 4  ;;  %s53_s2 = int_to_ptr.vmem [resolvable:$true] %s52_s2 }
   0xb   :  { %58 = dma.hbm_to_vmem [thread:$0]  %s51_s12, 2048, %s53_s2, [#allocation11], %s871_s29, %s871_s29, %s872_s30  }
   0xc   :  { %864 = dma.done.wait [#allocation8], 128  }
   0xd   :  { %865 = vsyncadd [#allocation8], 4294967168 }
   0xe   :  { %866 = dma.done.wait [#allocation11], 4096  }
   0xf   :  { %867 = vsyncadd [#allocation11], 4294963200  ;;  %v623_v0 = vld [vmem:[#allocation10 + $0x70] sm:$0xf]  ;;  %v715_v1 = vld [vmem:[#allocation10 + $0x74] sm:$0xf0] }
  0x10   :  { %v691_v2 = vld [vmem:[#allocation12 + $0x70] sm:$0xf]  ;;  %v624_v3 = vor.u32 %v715_v1, %v623_v0  ;;  %v732_v4 = vld [vmem:[#allocation12 + $0x74] sm:$0xf0]  ;;  %v615_v5 = vld [vmem:[#allocation10 + $0x60] sm:$0xf] }
  0x11   :  { %v713_v6 = vld [vmem:[#allocation10 + $0x64] sm:$0xf0]  ;;  %v692_v7 = vor.u32 %v732_v4, %v691_v2  ;;  %v683_v8 = vld [vmem:[#allocation12 + $0x60] sm:$0xf]  ;;  %v607_v12 = vld [vmem:[#allocation10 + $0x50] sm:$0xf] }
  0x12   :  { %v730_v9 = vld [vmem:[#allocation12 + $0x64] sm:$0xf0]  ;;  %180 = vmatpush.bf16.msra.mxu0 %v624_v3  ;;  %v616_v10 = vor.u32 %v713_v6, %v615_v5  ;;  %v711_v13 = vld [vmem:[#allocation10 + $0x54] sm:$0xf0]  ;;  %v675_v14 = vld [vmem:[#allocation12 + $0x50] sm:$0xf] }
  0x13   :  { %341 = vmatpush.bf16.msra.mxu2 %v692_v7  ;;  %v684_v11 = vor.u32 %v730_v9, %v683_v8  ;;  %v728_v15 = vld [vmem:[#allocation12 + $0x54] sm:$0xf0]  ;;  %v608_v16 = vor.u32 %v711_v13, %v607_v12  ;;  %v599_v18 = vld [vmem:[#allocation10 + $0x40] sm:$0xf]  ;;  %v709_v19 = vld [vmem:[#allocation10 + $0x44] sm:$0xf0] }
  0x14   :  { %v676_v17 = vor.u32 %v728_v15, %v675_v14  ;;  %v667_v20 = vld [vmem:[#allocation12 + $0x40] sm:$0xf]  ;;  %v726_v21 = vld [vmem:[#allocation12 + $0x44] sm:$0xf0]  ;;  %v600_v22 = vor.u32 %v709_v19, %v599_v18  ;;  %v591_v23 = vld [vmem:[#allocation10 + $0x30] sm:$0xf] }
  0x15   :  { %v714_v24 = vld [vmem:[#allocation10 + $0x74] sm:$0xf]  ;;  %v625_v25 = vld [vmem:[#allocation10 + $0x78] sm:$0xf0]  ;;  %v668_v26 = vor.u32 %v726_v21, %v667_v20  ;;  %v707_v27 = vld [vmem:[#allocation10 + $0x34] sm:$0xf0] }
  0x16   :  { %181 = vmatpush.bf16.msra.mxu0 %v616_v10  ;;  %v628_v28 = vor.u32 %v714_v24, %v625_v25  ;;  %v712_v29 = vld [vmem:[#allocation10 + $0x64] sm:$0xf]  ;;  %v617_v30 = vld [vmem:[#allocation10 + $0x68] sm:$0xf0]  ;;  %v659_v31 = vld [vmem:[#allocation12 + $0x30] sm:$0xf]  ;;  %v592_v34 = vor.u32 %v707_v27, %v591_v23 }
  0x17   :  { %342 = vmatpush.bf16.msra.mxu2 %v684_v11  ;;  %v724_v32 = vld [vmem:[#allocation12 + $0x34] sm:$0xf0]  ;;  %v620_v33 = vor.u32 %v712_v29, %v617_v30  ;;  %v710_v35 = vld [vmem:[#allocation10 + $0x54] sm:$0xf]  ;;  %v609_v36 = vld [vmem:[#allocation10 + $0x58] sm:$0xf0] }
  0x18   :  { %194 = vmatpush.bf16.msra.mxu1 %v628_v28  ;;  %v660_v37 = vor.u32 %v724_v32, %v659_v31  ;;  %v583_v38 = vld [vmem:[#allocation10 + $0x20] sm:$0xf]  ;;  %v705_v39 = vld [vmem:[#allocation10 + $0x24] sm:$0xf0]  ;;  %v612_v42 = vor.u32 %v710_v35, %v609_v36  ;;  %v708_v44 = vld [vmem:[#allocation10 + $0x44] sm:$0xf] }
  0x19   :  { %v651_v40 = vld [vmem:[#allocation12 + $0x20] sm:$0xf]  ;;  %v722_v41 = vld [vmem:[#allocation12 + $0x24] sm:$0xf0]  ;;  %v584_v43 = vor.u32 %v705_v39, %v583_v38  ;;  %v601_v45 = vld [vmem:[#allocation10 + $0x48] sm:$0xf0] }
  0x1a   :  { %182 = vmatpush.bf16.msra.mxu0 %v608_v16  ;;  %v652_v46 = vor.u32 %v722_v41, %v651_v40  ;;  %v575_v47 = vld [vmem:[#allocation10 + $0x10] sm:$0xf]  ;;  %v703_v48 = vld [vmem:[#allocation10 + $0x14] sm:$0xf0]  ;;  %v604_v51 = vor.u32 %v708_v44, %v601_v45  ;;  %v706_v53 = vld [vmem:[#allocation10 + $0x34] sm:$0xf] }
  0x1b   :  { %343 = vmatpush.bf16.msra.mxu2 %v676_v17  ;;  %v643_v49 = vld [vmem:[#allocation12 + $0x10] sm:$0xf]  ;;  %v720_v50 = vld [vmem:[#allocation12 + $0x14] sm:$0xf0]  ;;  %v576_v52 = vor.u32 %v703_v48, %v575_v47  ;;  %v593_v54 = vld [vmem:[#allocation10 + $0x38] sm:$0xf0] }
  0x1c   :  { %195 = vmatpush.bf16.msra.mxu1 %v620_v33  ;;  %v644_v55 = vor.u32 %v720_v50, %v643_v49  ;;  %v567_v56 = vld [vmem:[#allocation10] sm:$0xf]  ;;  %v701_v57 = vld [vmem:[#allocation10 + $0x4] sm:$0xf0]  ;;  %v596_v60 = vor.u32 %v706_v53, %v593_v54  ;;  %v704_v62 = vld [vmem:[#allocation10 + $0x24] sm:$0xf] }
  0x1d   :  { %v635_v58 = vld [vmem:[#allocation12] sm:$0xf]  ;;  %v718_v59 = vld [vmem:[#allocation12 + $0x4] sm:$0xf0]  ;;  %v568_v61 = vor.u32 %v701_v57, %v567_v56  ;;  %v585_v63 = vld [vmem:[#allocation10 + $0x28] sm:$0xf0] }
  0x1e   :  { %183 = vmatpush.bf16.msra.mxu0 %v600_v22  ;;  %v636_v0 = vor.u32 %v718_v59, %v635_v58  ;;  %v699_v1 = vld [vmem:[%s981_s0] sm:$0xff]  ;;  %v588_v2 = vor.u32 %v704_v62, %v585_v63  ;;  %v577_v5 = vld [vmem:[#allocation10 + $0x18] sm:$0xf0]  ;;  %v700_v7 = vld [vmem:[#allocation10 + $0x4] sm:$0xf]  ;;  %v877_v19 = vmov 0  }
  0x1f   :  { %344 = vmatpush.bf16.msra.mxu2 %v668_v26  ;;  %v937_v3 = vld [vmem:[%s982_s1] sm:$0xff]  ;;  %v569_v8 = vld [vmem:[#allocation10 + $0x8] sm:$0xf0]  ;;  %754 = vset.pattern.permute.xlu0 %v877_v19  ;;  %v739_v21 = vld [vmem:[#allocation7] sm:$0xff]   ;;  %vm407_vm0 = vcmask 64512   ;;  %vm230_vm1 = vcmask 7168  }
  0x20   :  { %196 = vmatpush.bf16.msra.mxu1 %v612_v42  ;;  %v702_v4 = vld [vmem:[#allocation10 + $0x14] sm:$0xf]  ;;  %v572_v9 = vor.u32 %v700_v7, %v569_v8  ;;  %753 = vset.pattern.permute.xlu1 %v877_v19  ;;  %v740_v22 = vunpack.c.l.bf16 %v739_v21  ;;  %v693_v26 = vld [vmem:[#allocation12 + $0x78] sm:$0xf0]  ;;  %v729_v27 = vld [vmem:[#allocation12 + $0x64] sm:$0xf]  ;;  %v741_v32 = vunpack.c.h.bf16 %v739_v21 }
  0x21   :  { %v580_v6 = vor.u32 %v702_v4, %v577_v5  ;;  %755 = vset.pattern.permute.xlu2 %v877_v19  ;;  %v731_v25 = vld [vmem:[#allocation12 + $0x74] sm:$0xf]  ;;  %v685_v30 = vld [vmem:[#allocation12 + $0x68] sm:$0xf0]  ;;  %v677_v35 = vld [vmem:[#allocation12 + $0x58] sm:$0xf0] }
  0x22   :  { %184 = vmatpush.bf16.msra.mxu0 %v592_v34  ;;  %v696_v29 = vor.u32 %v731_v25, %v693_v26  ;;  %v688_v33 = vor.u32 %v729_v27, %v685_v30  ;;  %v727_v34 = vld [vmem:[#allocation12 + $0x54] sm:$0xf]  ;;  %v725_v41 = vld [vmem:[#allocation12 + $0x44] sm:$0xf]  ;;  %v669_v42 = vld [vmem:[#allocation12 + $0x48] sm:$0xf0] }
  0x23   :  { %345 = vmatpush.bf16.msra.mxu2 %v660_v37  ;;  %v878_v37 = vmov -inf   ;;  %v680_v39 = vor.u32 %v727_v34, %v677_v35  ;;  %v672_v44 = vor.u32 %v725_v41, %v669_v42  ;;  %v723_v45 = vld [vmem:[#allocation12 + $0x34] sm:$0xf]  ;;  %v721_v49 = vld [vmem:[#allocation12 + $0x24] sm:$0xf]  ;;  %v879_v59 = vmov 0.0  }
  0x24   :  { %197 = vmatpush.bf16.msra.mxu1 %v604_v51  ;;  %355 = vmatpush.bf16.msra.mxu3 %v696_v29  ;;  %231 = vst.msk [vmem:[#allocation4] sm:$0xff] %vm230_vm1, %v878_v37  ;;  %v653_v50 = vld [vmem:[#allocation12 + $0x28] sm:$0xf0]  ;;  %v645_v53 = vld [vmem:[#allocation12 + $0x18] sm:$0xf0]  ;;  %v214_v58 = vld [vmem:[%s984_s3] sm:$0xff] }
  0x25   :  { %232 = vst.msk [vmem:[#allocation4 + $0x8] sm:$0xff] %vm230_vm1, %v878_v37  ;;  %v656_v51 = vor.u32 %v721_v49, %v653_v50  ;;  %v637_v56 = vld [vmem:[#allocation12 + $0x8] sm:$0xf0]  ;;  %vm472_vm2 = vcmask 1043456   ;;  %s547_s22 = sshll.u32 %s987_s6, 4  ;;  %s548_s22 = int_to_ptr.hbm [resolvable:$true] %s547_s22 }
  0x26   :  { %185 = vmatpush.bf16.msra.mxu0 %v584_v43  ;;  %233 = vst.msk [vmem:[#allocation5] sm:$0xff] %vm230_vm1, %v879_v59 }
  0x27   :  { %346 = vmatpush.bf16.msra.mxu2 %v652_v46  ;;  %v661_v46 = vld [vmem:[#allocation12 + $0x38] sm:$0xf0]  ;;  %234 = vst.msk [vmem:[#allocation5 + $0x8] sm:$0xff] %vm230_vm1, %v879_v59 }
  0x28   :  { %198 = vmatpush.bf16.msra.mxu1 %v596_v60  ;;  %356 = vmatpush.bf16.msra.mxu3 %v688_v33  ;;  %v664_v48 = vor.u32 %v723_v45, %v661_v46 }
  0x2a   :  { %186 = vmatpush.bf16.msra.mxu0 %v576_v52  ;;  %v719_v52 = vld [vmem:[#allocation12 + $0x14] sm:$0xf] }
  0x2b   :  { %347 = vmatpush.bf16.msra.mxu2 %v644_v55  ;;  %v648_v54 = vor.u32 %v719_v52, %v645_v53  ;;  %v717_v55 = vld [vmem:[#allocation12 + $0x4] sm:$0xf]  ;;  %v405_v60 = vld [vmem:[#allocation4] sm:$0xff] }
  0x2c   :  { %199 = vmatpush.bf16.msra.mxu1 %v588_v2  ;;  %357 = vmatpush.bf16.msra.mxu3 %v680_v39  ;;  %v640_v57 = vor.u32 %v717_v55, %v637_v56 }
  0x2d   :  { %v446_v29 = vld [vmem:[#allocation5] sm:$0xff] }
  0x2e   :  { %187 = vmatpush.bf16.msra.mxu0 %v568_v61  ;;  %v447_v33 = vld [vmem:[#allocation5 + $0x8] sm:$0xff] }
  0x2f   :  { %348 = vmatpush.bf16.msra.mxu2 %v636_v0  ;;  %v406_v0 = vld [vmem:[#allocation4 + $0x8] sm:$0xff] }
  0x30   :  { %200 = vmatpush.bf16.msra.mxu1 %v580_v6  ;;  %358 = vmatpush.bf16.msra.mxu3 %v672_v44  ;;  %v215_v6 = vld [vmem:[%s984_s3 + $0x8] sm:$0xff]  ;;  %s880_s3 = smov [#allocation13]  }
  0x31   :  { %188 = vmatmul.bf16.vlgmr.msra.gmra.mxu0 %v699_v1  ;;  %s545_s19 = sshll.u32 %s880_s3, 4  ;;  %s546_s19 = int_to_ptr.vmem [resolvable:$true] %s545_s19 }
  0x32   :  { %349 = vmatmul.bf16.vlgmr.msra.gmra.mxu2 %v937_v3 }
  0x34   :  { %201 = vmatpush.bf16.msra.mxu1 %v572_v9  ;;  %359 = vmatpush.bf16.msra.mxu3 %v664_v48 }
  0x37   :  { %202 = vmatmul.bf16.vlgmr.msra.gmra.mxu1 %v699_v1 }
  0x38   :  { %360 = vmatpush.bf16.msra.mxu3 %v656_v51 }
  0x3c   :  { %361 = vmatpush.bf16.msra.mxu3 %v648_v54 }
  0x40   :  { %362 = vmatpush.bf16.msra.mxu3 %v640_v57 }
  0x43   :  { %363 = vmatmul.bf16.vlgmr.msra.gmra.mxu3 %v937_v3 }
  0xae   :  { %v189_v10 = vpop.f32.mrf.mxu0 }
  0xb4   :  { %v940_v20 = vpop.f32.mrf.mxu1 }
  0xb5   :  { %v350_v11 = vpop.f32.mrf.mxu2  ;;  %v212_v49 = vmax.f32 %v940_v20, 0.0 }
  0xb6   :  { %v369_v12 = vpack.c.bf16 %v350_v11, %v350_v11  ;;  %v191_v13 = vpop.f32.mrf.mxu0 }
  0xb7   :  { %v736_v14 = vpack.c.bf16 %v191_v13, %v189_v10 }
  0xb8   :  { %386 = vmatpush.bf16.xpose.msrb.mxu0 %v369_v12 }
  0xb9   :  { %737 = vst [vmem:[#allocation2] sm:$0xff] %v736_v14  }
  0xbc   :  { %v942_v23 = vpop.f32.mrf.mxu1 }
  0xbd   :  { %v352_v15 = vpop.f32.mrf.mxu2  ;;  %v213_v57 = vmax.f32 %v942_v23, 0.0 }
  0xbe   :  { %v370_v16 = vpack.c.bf16 %v352_v15, %v352_v15 }
  0xc0   :  { %399 = vmatpush.bf16.xpose.msrb.mxu1 %v370_v16  ;;  %v373_v17 = vld [vmem:[#allocation2] sm:$0xf]  ;;  %v374_v18 = vld [vmem:[#allocation2 + $0x4] sm:$0xf] }
  0xc1   :  { %387 = vmatmul.bf16.vlgmr.msrb.gmra.mxu0 %v373_v17 }
  0xc6   :  { %v364_v7 = vpop.f32.mrf.mxu3 }
  0xc7   :  { %400 = vmatmul.bf16.vlgmr.msrb.gmra.mxu1 %v374_v18  ;;  %v371_v8 = vpack.c.bf16 %v364_v7, %v364_v7 }
  0xc9   :  { %v474_v9 = vsel %vm472_vm2, %v371_v8, 0 }
  0xca   :  { %483 = vmatpush.bf16.msrb.mxu2 %v474_v9 }
  0xce   :  { %v366_v10 = vpop.f32.mrf.mxu3 }
  0xcf   :  { %v372_v11 = vpack.c.bf16 %v366_v10, %v366_v10 }
  0xd1   :  { %v493_v12 = vsel %vm472_vm2, %v372_v11, 0 }
  0xd2   :  { %502 = vmatpush.bf16.msrb.mxu3 %v493_v12 }
 0x13e   :  { %v388_v24 = vpop.f32.mrf.mxu0 }
 0x13f   :  { %v944_v28 = vadd.f32 %v740_v22, %v388_v24 }
 0x141   :  { %v408_v31 = vsel %vm407_vm0, %v944_v28, -inf }
 0x142   :  { %409 = vmax.xlane.f32.xlu0 %v408_v31 }
 0x144   :  { %v401_v36 = vpop.f32.mrf.mxu1 }
 0x145   :  { %v949_v38 = vadd.f32 %v741_v32, %v401_v36 }
 0x146   :  { %v390_v40 = vpop.f32.mrf.mxu0 }
 0x147   :  { %v411_v43 = vsel %vm407_vm0, %v949_v38, -inf }
 0x14a   :  { %412 = vmax.xlane.f32.xlu0 %v411_v43 }
 0x14c   :  { %v403_v47 = vpop.f32.mrf.mxu1 }
 0x15e   :  { %218 = vperm.xlu0 %754, %v214_v58  }
 0x1b5   :  { %v410_v61 = vpop.xlane.xlu0 %409 }
 0x1b6   :  { %v414_v62 = vmax.f32 %v405_v60, %v410_v61 }
 0x1b8   :  { %512 = vst.msk [vmem:[#allocation4] sm:$0xff] %vm230_vm1, %v414_v62  ;;  %424 = vperm.xlu1 %753, %v414_v62   ;;  %v416_v63 = vsub.f32 %v405_v60, %v414_v62 }
 0x1ba   :  { %v418_v1 = vmul.f32 1.442695, %v416_v63 }
 0x1bc   :  { %756 = vpow2.f32 %v418_v1 }
 0x1bd   :  { %v413_v2 = vpop.xlane.xlu0 %412 }
 0x1be   :  { %v415_v4 = vmax.f32 %v406_v0, %v413_v2 }
 0x1c0   :  { %v417_v5 = vsub.f32 %v406_v0, %v415_v4  ;;  %513 = vst.msk [vmem:[#allocation4 + $0x8] sm:$0xff] %vm230_vm1, %v415_v4  ;;  %429 = vperm.xlu1 %753, %v415_v4  }
 0x1c2   :  { %v757_v3 = vpop.eup %756  ;;  %v420_v27 = vmul.f32 1.442695, %v417_v5 }
 0x1c3   :  { %v448_v30 = vmul.f32 %v757_v3, %v446_v29 }
 0x1c8   :  { %459 = vperm.xlu1 %753, %v757_v3  }
 0x1d0   :  { %223 = vperm.xlu1 %753, %v215_v6   ;;  %v219_v48 = vpop.permute.xlu0 %218 }
 0x1d1   :  { %v226_v52 = vmul.f32 %v219_v48, %v212_v49 }
 0x22a   :  { %v425_v13 = vpop.permute.xlu1 %424 }
 0x22b   :  { %v432_v14 = vsub.f32 %v944_v28, %v425_v13 }
 0x22d   :  { %v434_v15 = vmul.f32 1.442695, %v432_v14 }
 0x22f   :  { %758 = vpow2.f32 %v434_v15 }
 0x232   :  { %v430_v16 = vpop.permute.xlu1 %429 }
 0x233   :  { %v433_v17 = vsub.f32 %v949_v38, %v430_v16 }
 0x235   :  { %v759_v18 = vpop.eup %758  ;;  %v436_v19 = vmul.f32 1.442695, %v433_v17 }
 0x236   :  { %v438_v21 = vsel %vm407_vm0, %v759_v18, 0.0  ;;  %v444_v22 = vpack.c.bf16 %v759_v18, %v759_v18 }
 0x237   :  { %760 = vpow2.f32 %v436_v19  ;;  %439 = vadd.xlane.f32.xlu2 %v438_v21 }
 0x238   :  { %697 = vmatmul.msk.bf16.vlgmr.msrb.gmra.mxu2 %vm407_vm0, %v444_v22  ;;  %762 = vpow2.f32 %v420_v27 }
 0x23a   :  { %v460_v45 = vpop.permute.xlu1 %459 }
 0x23b   :  { %v467_v47 = vmul.f32 0.0, %v460_v45 }
 0x23d   :  { %v761_v24 = vpop.eup %760 }
 0x23e   :  { %v441_v25 = vsel %vm407_vm0, %v761_v24, 0.0  ;;  %v445_v26 = vpack.c.bf16 %v761_v24, %v761_v24  ;;  %v763_v28 = vpop.eup %762 }
 0x23f   :  { %442 = vadd.xlane.f32.xlu2 %v441_v25  ;;  %v449_v34 = vmul.f32 %v763_v28, %v447_v33 }
 0x240   :  { %698 = vmatmul.msk.bf16.vlgmr.msrb.gmra.mxu3 %vm407_vm0, %v445_v26 }
 0x242   :  { %v224_v46 = vpop.permute.xlu1 %223 }
 0x243   :  { %v227_v60 = vmul.f32 %v224_v46, %v213_v57 }
 0x257   :  { %464 = vperm.xlu2 %755, %v763_v28  }
 0x2aa   :  { %v440_v31 = vpop.xlane.xlu2 %439 }
 0x2ab   :  { %v450_v32 = vadd.f32 %v448_v30, %v440_v31 }
 0x2ad   :  { %453 = vst.msk [vmem:[#allocation5] sm:$0xff] %vm230_vm1, %v450_v32 }
 0x2b2   :  { %v443_v35 = vpop.xlane.xlu2 %442 }
 0x2b3   :  { %v451_v36 = vadd.f32 %v449_v34, %v443_v35 }
 0x2b4   :  { %v517_v37 = vld [vmem:[#allocation5] sm:$0xff] }
 0x2b5   :  { %454 = vst.msk [vmem:[#allocation5 + $0x8] sm:$0xff] %vm230_vm1, %v451_v36  ;;  %764 = vrcp.f32 %v517_v37 }
 0x2ba   :  { %v465_v54 = vpop.permute.xlu2 %464 }
 0x2bb   :  { %v765_v38 = vpop.eup %764  ;;  %v485_v39 = vpop.f32.mrf.mxu2  ;;  %v468_v56 = vmul.f32 0.0, %v465_v54 }
 0x2bc   :  { %525 = vperm.xlu1 %753, %v765_v38   ;;  %v518_v40 = vld [vmem:[#allocation5 + $0x8] sm:$0xff]  ;;  %v508_v50 = vadd.f32 %v485_v39, %v467_v47 }
 0x2bd   :  { %766 = vrcp.f32 %v518_v40 }
 0x2c3   :  { %v767_v41 = vpop.eup %766  ;;  %v487_v42 = vpop.f32.mrf.mxu2 }
 0x2c4   :  { %v504_v43 = vpop.f32.mrf.mxu3  ;;  %530 = vperm.xlu1 %753, %v767_v41  }
 0x2c5   :  { %v509_v58 = vadd.f32 %v504_v43, %v468_v56 }
 0x2cc   :  { %v506_v44 = vpop.f32.mrf.mxu3 }
 0x32e   :  { %v526_v51 = vpop.permute.xlu1 %525 }
 0x32f   :  { %v533_v53 = vmul.f32 %v526_v51, %v508_v50 }
 0x331   :  { %v537_v55 = vadd.f32 %v533_v53, %v226_v52 }
 0x333   :  { %539 = vst [vmem:[#allocation13] sm:$0xff] %v537_v55 }
 0x336   :  { %v531_v59 = vpop.permute.xlu1 %530 }
 0x337   :  { %v534_v20 = vmul.f32 %v531_v59, %v509_v58 }
 0x339   :  { %v538_v61 = vadd.f32 %v534_v20, %v227_v60 }
 0x33b   :  { %540 = vst [vmem:[#allocation13 + $0x8] sm:$0xff] %v538_v61 }
 0x33c   :  { %553 = dma.vmem_to_hbm [thread:$0]  %s546_s19, 256, %s548_s22, [#allocation9], %s871_s29, %s871_s29, %s872_s30  }
 0x33d   :  { %868 = dma.done.wait [#allocation9], 256  }
 0x33e   :  { %869 = vsyncadd [#allocation9], 4294967040 }
 0x33f   :  { %558 = vsyncpa [#allocation8], 1 }
 0x340   :  { %559 = vsyncpa [#allocation11], 1 }
 0x341   :  { %560 = vsyncpa [#allocation9], 1 }

</bundles_post_ra>
